<compile_context>
chip_gen: v6e
topology: v6e:2x2x1
jax: 0.10.0
libtpu: 0.0.40
codegen_flags: <defaults>
</compile_context>

<pallas_src>
import functools

import jax
import jax.numpy as jnp
from jax.experimental import pallas as pl
from jax.experimental.pallas import tpu as pltpu


def _round_up(x, m):
    return (x + m - 1) // m * m


def _fft_loss_kernel(basis_ref, o_ref, y_ref, partial_ref):
    # basis_ref   : (2*f_tile, L) bf16 -- rows [0:f_tile] = cos, [f_tile:] = -sin
    #               (rows for padded frequencies f >= F are all-zero)
    # o_ref/y_ref : (L, lane_tile) f32 lane-dense chunk of the (L, B*C) data
    # partial_ref : (8, lane_tile) f32 accumulator, resident across the f axis
    f_tile = basis_ref.shape[0] // 2
    j = pl.program_id(1)  # frequency-block index (inner, "arbitrary" axis)

    @pl.when(j == 0)
    def _():
        partial_ref[...] = jnp.zeros_like(partial_ref)

    # Subtract in f32 (preserves cancellation), cast only the matmul input.
    d = (o_ref[...] - y_ref[...]).astype(jnp.bfloat16)                   # (L, lane_tile)

    # One fused MXU pass: [cos ; -sin] @ d  -> stacked [re ; im], f32 accum.
    ri = jnp.dot(basis_ref[...], d, preferred_element_type=jnp.float32)  # (2*f_tile, lane_tile)
    re = ri[:f_tile, :]
    im = ri[f_tile:, :]
    mag = jnp.sqrt(re * re + im * im)                                     # (f_tile, lane_tile) f32

    # Fold the f_tile rows down to an aligned (8, lane_tile) partial-sum tile
    # using plain VPU adds (static slices, no cross-lane reduce in-kernel).
    part = mag[0:8, :]
    for g in range(1, f_tile // 8):
        part = part + mag[8 * g:8 * (g + 1), :]
    partial_ref[...] += part


def fft_loss(outputs, batch_y, *, f_tile=None, lane_tile=None):
    assert outputs.shape == batch_y.shape
    B, L, C = outputs.shape
    F = L // 2 + 1                      # true rfft output length

    # ---- frequency tiling (inner, "arbitrary" reduction axis) ----
    if f_tile is None:
        basis_block_budget = 4 * 1024 * 1024           # bf16 bytes per basis block
        f_cap = max(8, (basis_block_budget // (2 * L * 2)) // 8 * 8)
        f_tile = min(_round_up(F, 8), f_cap)
    else:
        f_tile = max(8, _round_up(int(f_tile), 8))
    F_total = _round_up(F, f_tile)                      # padded frequency rows
    num_f_blocks = F_total // f_tile

    # ---- lane-dense repacking: (B, L, C) -> (L, B*C) padded to lane tile ----
    BC = B * C
    if lane_tile is None:
        data_budget = 16 * 1024 * 1024                  # 2 inputs x 2 bufs x L x lane x 4B
        lane_cap = max(128, (data_budget // (16 * L)) // 128 * 128)
        lane_tile = min(512, lane_cap, _round_up(BC, 128))
    else:
        lane_tile = max(128, _round_up(int(lane_tile), 128))
    N_pad = _round_up(BC, lane_tile)
    num_lane_blocks = N_pad // lane_tile

    o2 = jnp.transpose(outputs.astype(jnp.float32), (1, 0, 2)).reshape(L, BC)
    y2 = jnp.transpose(batch_y.astype(jnp.float32), (1, 0, 2)).reshape(L, BC)
    if N_pad != BC:
        o2 = jnp.pad(o2, ((0, 0), (0, N_pad - BC)))
        y2 = jnp.pad(y2, ((0, 0), (0, N_pad - BC)))

    # ---- fused real-DFT basis [cos ; -sin], bf16, padded rows zeroed ----
    # angle = 2*pi*((f*l) mod L)/L -- integer mod keeps phase accurate for
    # large L (avoids f32 precision loss in f*l).
    f_idx = jnp.arange(F_total, dtype=jnp.int32)[:, None]
    l_idx = jnp.arange(L, dtype=jnp.int32)[None, :]
    k = (f_idx * l_idx) % L
    ang = (2.0 * jnp.pi / L) * k.astype(jnp.float32)
    row_mask = (jnp.arange(F_total) < F)[:, None]
    cos_m = jnp.where(row_mask, jnp.cos(ang), 0.0)
    nsin_m = jnp.where(row_mask, -jnp.sin(ang), 0.0)
    # Per-f-block layout: block j = [cos rows of block j ; -sin rows of block j]
    basis = jnp.concatenate(
        [cos_m.reshape(num_f_blocks, f_tile, L),
         nsin_m.reshape(num_f_blocks, f_tile, L)],
        axis=1,
    ).reshape(num_f_blocks * 2 * f_tile, L).astype(jnp.bfloat16)

    cost = pl.CostEstimate(
        flops=int(2 * (2 * F_total) * L * N_pad),
        transcendentals=int(F_total * N_pad),
        bytes_accessed=int(2 * L * N_pad * 4                         # data (once per lane block)
                           + num_lane_blocks * 2 * F_total * L * 2   # basis re-fetch per lane block
                           + num_lane_blocks * 8 * lane_tile * 4),   # partial-sum output
    )

    partials = pl.pallas_call(
        _fft_loss_kernel,
        out_shape=jax.ShapeDtypeStruct((num_lane_blocks * 8, lane_tile), jnp.float32),
        grid_spec=pltpu.PrefetchScalarGridSpec(
            num_scalar_prefetch=0,
            grid=(num_lane_blocks, num_f_blocks),
            in_specs=[
                pl.BlockSpec((2 * f_tile, L), lambda i, j: (j, 0)),      # basis f-block
                pl.BlockSpec((L, lane_tile), lambda i, j: (0, i)),       # outputs chunk
                pl.BlockSpec((L, lane_tile), lambda i, j: (0, i)),       # batch_y chunk
            ],
            out_specs=pl.BlockSpec((8, lane_tile), lambda i, j: (i, 0)),  # resident accumulator
        ),
        compiler_params=pltpu.CompilerParams(
            dimension_semantics=("parallel", "arbitrary"),
            vmem_limit_bytes=48 * 1024 * 1024,
        ),
        cost_estimate=cost,
    )(basis, o2, y2)

    # Padded basis rows and padded lanes contribute exactly 0, so divide by the
    # true element count B * F * C.
    return jnp.sum(partials) / jnp.float32(B * F * C)


if __name__ == "__main__":
    key = jax.random.PRNGKey(0)

    fft_loss_jit = jax.jit(fft_loss, static_argnames=("f_tile", "lane_tile"))

    def _ref(o, y):
        return jnp.mean(jnp.abs(jnp.fft.rfft(o, axis=1) - jnp.fft.rfft(y, axis=1)))

    # Check 1: small shapes, single frequency block.
    k1, k2 = jax.random.split(key)
    B, L, C = 2, 8, 4
    outputs = jax.random.normal(k1, (B, L, C), dtype=jnp.float32)
    batch_y = jax.random.normal(k2, (B, L, C), dtype=jnp.float32)
    loss = jax.block_until_ready(fft_loss_jit(outputs, batch_y))
    ref = _ref(outputs, batch_y)
    assert jnp.allclose(loss, ref, rtol=2e-2, atol=2e-3), (loss, ref)

    # Check 2: exercise the multi-f-block accumulation path (f_tile forced to 8
    # -> 3 frequency blocks for L=32), still small shapes.
    k3, k4 = jax.random.split(k1)
    B2, L2, C2 = 2, 32, 4
    outputs2 = jax.random.normal(k3, (B2, L2, C2), dtype=jnp.float32)
    batch_y2 = jax.random.normal(k4, (B2, L2, C2), dtype=jnp.float32)
    loss2 = jax.block_until_ready(fft_loss_jit(outputs2, batch_y2, f_tile=8))
    ref2 = _ref(outputs2, batch_y2)
    assert jnp.allclose(loss2, ref2, rtol=2e-2, atol=2e-3), (loss2, ref2)

    print("KERNEL_OK")
</pallas_src>

<mosaic_0001>
module attributes {stable_mosaic.version = 11 : i64} {
  func.func @_fft_loss_kernel(%arg0: i32, %arg1: i32, %arg2: memref<16x8xbf16, #tpu.memory_space<vmem>>, %arg3: memref<8x128xf32, #tpu.memory_space<vmem>>, %arg4: memref<8x128xf32, #tpu.memory_space<vmem>>, %arg5: memref<8x128xf32, #tpu.memory_space<vmem>>) attributes {dimension_semantics = [#tpu.dimension_semantics<parallel>, #tpu.dimension_semantics<arbitrary>], iteration_bounds = array<i64: 1, 1>, scalar_prefetch = 0 : i64, scratch_operands = 0 : i64, tpu.core_type = #tpu.core_type<tc>, window_params = [{transform_indices = @transform_0, window_bounds = array<i64: 16, 8>}, {transform_indices = @transform_1, window_bounds = array<i64: 8, 128>}, {transform_indices = @transform_2, window_bounds = array<i64: 8, 128>}, {transform_indices = @transform_3, window_bounds = array<i64: 8, 128>}]} {
    %c0_i32 = arith.constant 0 : i32
    %0 = arith.cmpi eq, %arg1, %c0_i32 : i32
    %1 = arith.extui %0 : i1 to i32
    %c0_i32_0 = arith.constant 0 : i32
    %2 = arith.cmpi ne, %1, %c0_i32_0 : i32
    scf.if %2 {
      %cst_10 = arith.constant 0.000000e+00 : f32
      %18 = vector.broadcast %cst_10 : f32 to vector<8x128xf32>
      %c0_11 = arith.constant 0 : index
      %c0_12 = arith.constant 0 : index
      %19 = vector.load %arg5[%c0_11, %c0_12] : memref<8x128xf32, #tpu.memory_space<vmem>>, vector<8x128xf32>
      tpu.vector_store %arg5[%c0_11, %c0_12], %18 {strides = array<i32>} : memref<8x128xf32, #tpu.memory_space<vmem>>, vector<8x128xf32>,
    } else {
    }
    %c0 = arith.constant 0 : index
    %c0_1 = arith.constant 0 : index
    %3 = vector.load %arg3[%c0, %c0_1] : memref<8x128xf32, #tpu.memory_space<vmem>>, vector<8x128xf32>
    %c0_2 = arith.constant 0 : index
    %c0_3 = arith.constant 0 : index
    %4 = vector.load %arg4[%c0_2, %c0_3] : memref<8x128xf32, #tpu.memory_space<vmem>>, vector<8x128xf32>
    %5 = arith.subf %3, %4 : vector<8x128xf32>
    %6 = arith.truncf %5 : vector<8x128xf32> to vector<8x128xbf16>
    %c0_4 = arith.constant 0 : index
    %c0_5 = arith.constant 0 : index
    %7 = vector.load %arg2[%c0_4, %c0_5] : memref<16x8xbf16, #tpu.memory_space<vmem>>, vector<16x8xbf16>
    %cst = arith.constant dense<0.000000e+00> : vector<16x128xf32>
    %8 = tpu.matmul %7, %6, %cst {dimension_numbers = #tpu.dot_dimension_numbers<[1], [0], [0], [1], [0, 0, 1, 1], [], []>} : vector<16x8xbf16>, vector<8x128xbf16>, vector<16x128xf32> -> vector<16x128xf32>
    %9 = vector.extract_strided_slice %8 {offsets = [0, 0], sizes = [8, 128], strides = [1, 1]} : vector<16x128xf32> to vector<8x128xf32>
    %10 = vector.extract_strided_slice %8 {offsets = [8, 0], sizes = [8, 128], strides = [1, 1]} : vector<16x128xf32> to vector<8x128xf32>
    %11 = arith.mulf %9, %9 : vector<8x128xf32>
    %12 = arith.mulf %10, %10 : vector<8x128xf32>
    %13 = arith.addf %11, %12 : vector<8x128xf32>
    %14 = math.sqrt %13 : vector<8x128xf32>
    %c0_6 = arith.constant 0 : index
    %c0_7 = arith.constant 0 : index
    %15 = vector.load %arg5[%c0_6, %c0_7] : memref<8x128xf32, #tpu.memory_space<vmem>>, vector<8x128xf32>
    %16 = arith.addf %15, %14 : vector<8x128xf32>
    %c0_8 = arith.constant 0 : index
    %c0_9 = arith.constant 0 : index
    %17 = vector.load %arg5[%c0_8, %c0_9] : memref<8x128xf32, #tpu.memory_space<vmem>>, vector<8x128xf32>
    tpu.vector_store %arg5[%c0_8, %c0_9], %16 {strides = array<i32>} : memref<8x128xf32, #tpu.memory_space<vmem>>, vector<8x128xf32>,
    return
  }
  func.func @transform_0(%arg0: i32, %arg1: i32) -> (i32, i32) {
    %c0_i32 = arith.constant 0 : i32
    %c0_i32_0 = arith.constant 0 : i32
    return %arg1, %c0_i32 : i32, i32
  }
  func.func @transform_1(%arg0: i32, %arg1: i32) -> (i32, i32) {
    %c0_i32 = arith.constant 0 : i32
    %c0_i32_0 = arith.constant 0 : i32
    return %c0_i32, %arg0 : i32, i32
  }
  func.func @transform_2(%arg0: i32, %arg1: i32) -> (i32, i32) {
    %c0_i32 = arith.constant 0 : i32
    %c0_i32_0 = arith.constant 0 : i32
    return %c0_i32, %arg0 : i32, i32
  }
  func.func @transform_3(%arg0: i32, %arg1: i32) -> (i32, i32) {
    %c0_i32 = arith.constant 0 : i32
    %c0_i32_0 = arith.constant 0 : i32
    return %arg0, %c0_i32 : i32, i32
  }
}

</mosaic_0001>

<bundles_post_ra>
// kernel: fft_loss.1
= control target key start
LH: loop header
LB: loop body
LE: loop exit
PB: predicated region body
PF: predicated region fallthrough
CT: control target
= control target key end

     0   :  { %v112_v0 = vmov 0.0   ;;  %vm113_vm0 = vmmov 0   ;;  %vm35_vm1 = vcmask 1043456   ;;  %vm31_vm2 = vcmask 64512   ;;  %s146_s1 = inlined_call_operand.vmem [shape: f32[8,128], index: 1, kind: input, shape index: {}]   ;;  %s147_s2 = inlined_call_operand.vmem [shape: f32[8,128], index: 2, kind: input, shape index: {}]   ;;  %s148_s0 = inlined_call_operand.vmem [shape: bf16[16,8], index: 0, kind: input, shape index: {}]   ;;  %s149_s3 = inlined_call_operand.vmem [shape: f32[8,128], index: 3, kind: output, shape index: {}]  }
   0x1   :  { %101 = vmatprep.subr.bf16.mxu0 %v112_v0  ;;  %v20_v1 = vld [vmem:[%s146_s1] sm:$0xff]  ;;  %103 = vmatprep.mubr.msk.bf16.mxu0 %vm113_vm0, %v112_v0 }
   0x2   :  { %v21_v2 = vld [vmem:[%s147_s2] sm:$0xff] }
   0x3   :  { %v22_v3 = vsub.f32 %v20_v1, %v21_v2  ;;  %v109_v6 = vld [vmem:[%s148_s0] sm:$0xff]  }
   0x5   :  { %v23_v4 = vpack.c.bf16 %v22_v3, %v22_v3 }
   0x7   :  { %v37_v5 = vsel %vm35_vm1, %v23_v4, 0 }
   0x8   :  { %102 = vmatpush3.bf16.msra.mxu0 %v37_v5 }
   0xb   :  { %104 = vmatmul.mubr.msk.bf16.vlgmr.msra.gmra.mxu0 %vm31_vm2, %v109_v6 }
  0xcb   :  { %v73_v7 = vpop.f32.mrf.mxu0 }
  0xcc   :  { %v80_v10 = vmul.f32 %v73_v7, %v73_v7 }
  0xcd   :  { %v105_v8 = vpop.f32.mrf.mxu0 }
  0xcf   :  { %v76_v9 = vpop.f32.mrf.mxu0 }
  0xd0   :  { %v81_v11 = vmul.f32 %v76_v9, %v76_v9 }
  0xd1   :  { %v106_v12 = vpop.f32.mrf.mxu0 }
  0xd2   :  { %v82_v13 = vadd.f32 %v81_v11, %v80_v10 }
  0xd4   :  { %110 = vrsqrt.f32 %v82_v13  ;;  %vm85_vm3 = vcmp.eq.f32.partialorder %v82_v13, inf  ;;  %v88_v16 = vand.u32 2147483648, %v82_v13  ;;  %vm87_vm4 = vcmp.eq.f32.partialorder %v82_v13, 0.0 }
  0xe1   :  { %v111_v14 = vpop.eup %110 }
  0xe2   :  { %v84_v15 = vmul.f32 %v111_v14, %v82_v13 }
  0xe4   :  { %v86_v17 = vsel %vm85_vm3, %v82_v13, %v84_v15 }
  0xe5   :  { %v89_v18 = vsel %vm87_vm4, %v88_v16, %v86_v17 }
  0xe6   :  { %92 = vst [vmem:[%s149_s3] sm:$0xff] %v89_v18 }

</bundles_post_ra>
